<compile_context>
chip_gen: v7x
topology: tpu7x:2x2x1
jax: 0.10.0
libtpu: 0.0.40
codegen_flags: <defaults>
</compile_context>

<pallas_src>
import functools

import numpy as np
import jax
import jax.numpy as jnp
from jax.experimental import pallas as pl
from jax.experimental.pallas import tpu as pltpu

HIDDEN = 32        # PyTorch module hidden width
LANE = 128         # TPU lane width; hidden/class dims zero-padded to this inside VMEM
TILE_B_MAX = 4096  # batch-tile cap (sublane-aligned)
NEG_MASK = -1.0e30  # additive softmax mask for padded class lanes


def _round_up(n, m):
    return ((n + m - 1) // m) * m


def _choose_tile_b(batch, tile_b_max):
    # Aim for >=2 grid steps when the batch is big enough (v7x: two TensorCores under
    # "parallel"), keep tiles sublane-aligned, cap per-step VMEM via tile_b_max.
    target = _round_up(max(1, (batch + 1) // 2), 8)
    return max(8, min(tile_b_max, target))


def _mlp_kernel(x_ref, w_ref, b_ref, out_ref, *, input_size, num_classes, approx_recip):
    """One batch tile: x (tile_b, input_size) f32 -> softmax probs (tile_b, num_classes)."""
    cdt = w_ref.dtype                      # matmul input dtype (bf16 default, or f32)
    x = x_ref[...].astype(cdt)             # in-kernel cast; x stays f32 in HBM
    b = b_ref[...]                         # (8, LANE) f32 bias slab

    # layer 0: input -> hidden (dropout do1 identity at inference)
    w0 = w_ref[0]                          # (LANE, LANE); rows >= input_size are zero
    h = jnp.dot(x, w0[:input_size, :], preferred_element_type=jnp.float32)
    h = jnp.maximum(h + b[0:1, :], 0.0)

    # layer 1 (do2 identity)
    h = jnp.dot(h.astype(cdt), w_ref[1], preferred_element_type=jnp.float32)
    h = jnp.maximum(h + b[1:2, :], 0.0)

    # layer 2 (do3 identity)
    h = jnp.dot(h.astype(cdt), w_ref[2], preferred_element_type=jnp.float32)
    h = jnp.maximum(h + b[2:3, :], 0.0)

    # output layer + ReLU (per the PyTorch module: ReLU before softmax)
    logits = jnp.dot(h.astype(cdt), w_ref[3], preferred_element_type=jnp.float32)
    logits = jnp.maximum(logits + b[3:4, :], 0.0)          # (tile_b, LANE), valid >= 0

    # Softmax over the class dim. Row 4 of the bias slab is 0 on the num_classes valid
    # lanes and -1e30 on pad lanes, so pad lanes drop out of max/exp/sum exactly with
    # one VPU add (no iota/compare/select needed).
    logits = logits + b[4:5, :]
    m = jnp.max(logits, axis=-1, keepdims=True)             # max over valid lanes only
    e = jnp.exp(logits - m)                                  # pad lanes underflow to 0
    denom = jnp.sum(e, axis=-1, keepdims=True)
    probs = e * pl.reciprocal(denom, approx=approx_recip)
    out_ref[...] = probs[:, :num_classes].astype(out_ref.dtype)


def _pack_params(params, input_size, num_classes, compute_dtype):
    """Pack the 4 weight matrices into one zero-padded (4, LANE, LANE) slab (compute
    dtype) and the 4 biases + softmax pad-mask into one (8, LANE) f32 slab."""
    w_slab = jnp.zeros((4, LANE, LANE), jnp.float32)
    w_slab = w_slab.at[0, :input_size, :HIDDEN].set(params["w0"])
    w_slab = w_slab.at[1, :HIDDEN, :HIDDEN].set(params["w1"])
    w_slab = w_slab.at[2, :HIDDEN, :HIDDEN].set(params["w2"])
    w_slab = w_slab.at[3, :HIDDEN, :num_classes].set(params["w3"])

    b_slab = jnp.zeros((8, LANE), jnp.float32)
    b_slab = b_slab.at[0, :HIDDEN].set(params["b0"].reshape(-1))
    b_slab = b_slab.at[1, :HIDDEN].set(params["b1"].reshape(-1))
    b_slab = b_slab.at[2, :HIDDEN].set(params["b2"].reshape(-1))
    b_slab = b_slab.at[3, :num_classes].set(params["b3"].reshape(-1))
    b_slab = b_slab.at[4, num_classes:].set(NEG_MASK)   # additive softmax lane mask
    return w_slab.astype(compute_dtype), b_slab


@functools.partial(jax.jit, static_argnames=("compute_dtype", "tile_b_max"))
def feedforward_structure_to_structure(x, params, *,
                                       compute_dtype=jnp.bfloat16,
                                       tile_b_max=TILE_B_MAX):
    """x: (batch, input_size) float32. params: dict of (in,out) weights / (1,out) biases.
    Returns (batch, num_classes) float32 softmax probabilities."""
    batch, input_size = x.shape
    num_classes = params["w3"].shape[1]

    w_slab, b_slab = _pack_params(params, input_size, num_classes, compute_dtype)

    tile_b = _choose_tile_b(batch, tile_b_max)
    grid = (pl.cdiv(batch, tile_b),)
    approx_recip = bool(np.dtype(compute_dtype) != np.dtype(np.float32))

    kernel = functools.partial(_mlp_kernel, input_size=input_size,
                               num_classes=num_classes, approx_recip=approx_recip)

    w_itemsize = np.dtype(compute_dtype).itemsize
    flops = 2 * batch * (input_size * HIDDEN + 2 * HIDDEN * HIDDEN
                         + HIDDEN * num_classes)
    bytes_accessed = (batch * input_size * 4          # x stream (f32 in HBM)
                      + batch * num_classes * 4       # output stream (f32)
                      + w_slab.size * w_itemsize + b_slab.size * 4)

    out = pl.pallas_call(
        kernel,
        out_shape=jax.ShapeDtypeStruct((batch, num_classes), jnp.float32),
        grid=grid,
        in_specs=[
            pl.BlockSpec((tile_b, input_size), lambda i: (i, 0)),   # batch-tiled x
            pl.BlockSpec((4, LANE, LANE), lambda i: (0, 0, 0)),     # resident weights
            pl.BlockSpec((8, LANE), lambda i: (0, 0)),              # resident biases/mask
        ],
        out_specs=pl.BlockSpec((tile_b, num_classes), lambda i: (i, 0)),
        compiler_params=pltpu.CompilerParams(
            dimension_semantics=("parallel",)),
        cost_estimate=pl.CostEstimate(flops=flops,
                                      transcendentals=batch * LANE,
                                      bytes_accessed=bytes_accessed),
    )(x, w_slab, b_slab)
    return out


def init_params(key, input_size, num_classes):
    """Deterministic synthetic params (PyTorch nn.Linear-like uniform init).
    Weights stored pre-transposed as (in, out)."""
    dims = [(input_size, HIDDEN), (HIDDEN, HIDDEN), (HIDDEN, HIDDEN),
            (HIDDEN, num_classes)]
    params = {}
    for i, (fan_in, fan_out) in enumerate(dims):
        key, kw, kb = jax.random.split(key, 3)
        bound = 1.0 / float(np.sqrt(fan_in))
        params[f"w{i}"] = jax.random.uniform(
            kw, (fan_in, fan_out), jnp.float32, minval=-bound, maxval=bound)
        params[f"b{i}"] = jax.random.uniform(
            kb, (1, fan_out), jnp.float32, minval=-bound, maxval=bound)
    return params


def reference(x, params):
    hp = jax.lax.Precision.HIGHEST
    h = jnp.maximum(jnp.dot(x, params["w0"], precision=hp) + params["b0"], 0.0)
    h = jnp.maximum(jnp.dot(h, params["w1"], precision=hp) + params["b1"], 0.0)
    h = jnp.maximum(jnp.dot(h, params["w2"], precision=hp) + params["b2"], 0.0)
    logits = jnp.maximum(jnp.dot(h, params["w3"], precision=hp) + params["b3"], 0.0)
    return jax.nn.softmax(logits, axis=-1)


if __name__ == "__main__":
    key = jax.random.PRNGKey(0)
    input_size, num_classes = 16, 3

    key, kx, kp = jax.random.split(key, 3)
    params = init_params(kp, input_size, num_classes)

    # --- check 1: tiny batch, default bf16 matmul path -----------------------
    batch = 2
    x = jax.random.uniform(kx, (batch, input_size), jnp.float32)
    ref = reference(x, params)
    out = jax.block_until_ready(feedforward_structure_to_structure(x, params))
    assert out.shape == (batch, num_classes)
    assert bool(jnp.allclose(out, ref, atol=2.5e-2))
    assert bool(jnp.allclose(jnp.sum(out, axis=-1), 1.0, atol=1e-2))

    # --- check 2: f32 compute path, tighter tolerance -------------------------
    out32 = jax.block_until_ready(
        feedforward_structure_to_structure(x, params, compute_dtype=jnp.float32))
    assert out32.shape == (batch, num_classes)
    assert bool(jnp.allclose(out32, ref, atol=1e-4, rtol=1e-4))
    assert bool(jnp.allclose(jnp.sum(out32, axis=-1), 1.0, atol=1e-4))

    # --- check 3: multi-step grid + ragged last block (no wrapper padding) ----
    key, kx2 = jax.random.split(key)
    batch2 = 40
    x2 = jax.random.uniform(kx2, (batch2, input_size), jnp.float32)
    out2 = jax.block_until_ready(
        feedforward_structure_to_structure(x2, params, compute_dtype=jnp.float32,
                                           tile_b_max=16))   # grid=(3,), last block ragged
    assert out2.shape == (batch2, num_classes)
    assert bool(jnp.allclose(out2, reference(x2, params), atol=1e-4, rtol=1e-4))

    print("KERNEL_OK")
</pallas_src>

<mosaic_0001>
module attributes {stable_mosaic.version = 11 : i64} {
  func.func @_mlp_kernel(%arg0: i32, %arg1: memref<8x16xf32, #tpu.memory_space<vmem>>, %arg2: memref<4x128x128xbf16, #tpu.memory_space<vmem>>, %arg3: memref<8x128xf32, #tpu.memory_space<vmem>>, %arg4: memref<8x3xf32, #tpu.memory_space<vmem>>) attributes {dimension_semantics = [#tpu.dimension_semantics<parallel>], iteration_bounds = array<i64: 1>, scalar_prefetch = 0 : i64, scratch_operands = 0 : i64, tpu.core_type = #tpu.core_type<tc>, window_params = [{transform_indices = @transform_0, window_bounds = array<i64: 8, 16>}, {pipeline_mode = #tpu.pipeline_mode<synchronous>, transform_indices = @transform_1, window_bounds = array<i64: 4, 128, 128>}, {pipeline_mode = #tpu.pipeline_mode<synchronous>, transform_indices = @transform_2, window_bounds = array<i64: 8, 128>}, {transform_indices = @transform_3, window_bounds = array<i64: 8, 3>}]} {
    %c0 = arith.constant 0 : index
    %c0_0 = arith.constant 0 : index
    %0 = vector.load %arg1[%c0, %c0_0] : memref<8x16xf32, #tpu.memory_space<vmem>>, vector<8x16xf32>
    %1 = arith.truncf %0 : vector<8x16xf32> to vector<8x16xbf16>
    %c0_1 = arith.constant 0 : index
    %c0_2 = arith.constant 0 : index
    %2 = vector.load %arg3[%c0_1, %c0_2] : memref<8x128xf32, #tpu.memory_space<vmem>>, vector<8x128xf32>
    %c0_3 = arith.constant 0 : index
    %c0_4 = arith.constant 0 : index
    %c0_5 = arith.constant 0 : index
    %3 = vector.load %arg2[%c0_3, %c0_4, %c0_5] : memref<4x128x128xbf16, #tpu.memory_space<vmem>>, vector<1x128x128xbf16>
    %4 = vector.shape_cast %3 : vector<1x128x128xbf16> to vector<128x128xbf16>
    %5 = vector.extract_strided_slice %4 {offsets = [0, 0], sizes = [16, 128], strides = [1, 1]} : vector<128x128xbf16> to vector<16x128xbf16>
    %cst = arith.constant dense<0.000000e+00> : vector<8x128xf32>
    %6 = tpu.matmul %1, %5, %cst {dimension_numbers = #tpu.dot_dimension_numbers<[1], [0], [0], [1], [0, 0, 1, 1], [], []>} : vector<8x16xbf16>, vector<16x128xbf16>, vector<8x128xf32> -> vector<8x128xf32>
    %7 = vector.extract_strided_slice %2 {offsets = [0, 0], sizes = [1, 128], strides = [1, 1]} : vector<8x128xf32> to vector<1x128xf32>
    %8 = vector.broadcast %7 : vector<1x128xf32> to vector<8x128xf32>
    %9 = arith.addf %6, %8 : vector<8x128xf32>
    %cst_6 = arith.constant 0.000000e+00 : f32
    %10 = vector.broadcast %cst_6 : f32 to vector<8x128xf32>
    %11 = arith.maximumf %9, %10 : vector<8x128xf32>
    %12 = arith.truncf %11 : vector<8x128xf32> to vector<8x128xbf16>
    %c1 = arith.constant 1 : index
    %c0_7 = arith.constant 0 : index
    %c0_8 = arith.constant 0 : index
    %13 = vector.load %arg2[%c1, %c0_7, %c0_8] : memref<4x128x128xbf16, #tpu.memory_space<vmem>>, vector<1x128x128xbf16>
    %14 = vector.shape_cast %13 : vector<1x128x128xbf16> to vector<128x128xbf16>
    %cst_9 = arith.constant dense<0.000000e+00> : vector<8x128xf32>
    %15 = tpu.matmul %12, %14, %cst_9 {dimension_numbers = #tpu.dot_dimension_numbers<[1], [0], [0], [1], [0, 0, 1, 1], [], []>} : vector<8x128xbf16>, vector<128x128xbf16>, vector<8x128xf32> -> vector<8x128xf32>
    %16 = vector.extract_strided_slice %2 {offsets = [1, 0], sizes = [1, 128], strides = [1, 1]} : vector<8x128xf32> to vector<1x128xf32>
    %17 = vector.broadcast %16 : vector<1x128xf32> to vector<8x128xf32>
    %18 = arith.addf %15, %17 : vector<8x128xf32>
    %cst_10 = arith.constant 0.000000e+00 : f32
    %19 = vector.broadcast %cst_10 : f32 to vector<8x128xf32>
    %20 = arith.maximumf %18, %19 : vector<8x128xf32>
    %21 = arith.truncf %20 : vector<8x128xf32> to vector<8x128xbf16>
    %c2 = arith.constant 2 : index
    %c0_11 = arith.constant 0 : index
    %c0_12 = arith.constant 0 : index
    %22 = vector.load %arg2[%c2, %c0_11, %c0_12] : memref<4x128x128xbf16, #tpu.memory_space<vmem>>, vector<1x128x128xbf16>
    %23 = vector.shape_cast %22 : vector<1x128x128xbf16> to vector<128x128xbf16>
    %cst_13 = arith.constant dense<0.000000e+00> : vector<8x128xf32>
    %24 = tpu.matmul %21, %23, %cst_13 {dimension_numbers = #tpu.dot_dimension_numbers<[1], [0], [0], [1], [0, 0, 1, 1], [], []>} : vector<8x128xbf16>, vector<128x128xbf16>, vector<8x128xf32> -> vector<8x128xf32>
    %25 = vector.extract_strided_slice %2 {offsets = [2, 0], sizes = [1, 128], strides = [1, 1]} : vector<8x128xf32> to vector<1x128xf32>
    %26 = vector.broadcast %25 : vector<1x128xf32> to vector<8x128xf32>
    %27 = arith.addf %24, %26 : vector<8x128xf32>
    %cst_14 = arith.constant 0.000000e+00 : f32
    %28 = vector.broadcast %cst_14 : f32 to vector<8x128xf32>
    %29 = arith.maximumf %27, %28 : vector<8x128xf32>
    %30 = arith.truncf %29 : vector<8x128xf32> to vector<8x128xbf16>
    %c3 = arith.constant 3 : index
    %c0_15 = arith.constant 0 : index
    %c0_16 = arith.constant 0 : index
    %31 = vector.load %arg2[%c3, %c0_15, %c0_16] : memref<4x128x128xbf16, #tpu.memory_space<vmem>>, vector<1x128x128xbf16>
    %32 = vector.shape_cast %31 : vector<1x128x128xbf16> to vector<128x128xbf16>
    %cst_17 = arith.constant dense<0.000000e+00> : vector<8x128xf32>
    %33 = tpu.matmul %30, %32, %cst_17 {dimension_numbers = #tpu.dot_dimension_numbers<[1], [0], [0], [1], [0, 0, 1, 1], [], []>} : vector<8x128xbf16>, vector<128x128xbf16>, vector<8x128xf32> -> vector<8x128xf32>
    %34 = vector.extract_strided_slice %2 {offsets = [3, 0], sizes = [1, 128], strides = [1, 1]} : vector<8x128xf32> to vector<1x128xf32>
    %35 = vector.broadcast %34 : vector<1x128xf32> to vector<8x128xf32>
    %36 = arith.addf %33, %35 : vector<8x128xf32>
    %cst_18 = arith.constant 0.000000e+00 : f32
    %37 = vector.broadcast %cst_18 : f32 to vector<8x128xf32>
    %38 = arith.maximumf %36, %37 : vector<8x128xf32>
    %39 = vector.extract_strided_slice %2 {offsets = [4, 0], sizes = [1, 128], strides = [1, 1]} : vector<8x128xf32> to vector<1x128xf32>
    %40 = vector.broadcast %39 : vector<1x128xf32> to vector<8x128xf32>
    %41 = arith.addf %38, %40 : vector<8x128xf32>
    %cst_19 = arith.constant dense<0xFF800000> : vector<8xf32>
    %42 = vector.multi_reduction <maximumf>, %41, %cst_19 [1] : vector<8x128xf32> to vector<8xf32>
    %43 = vector.shape_cast %42 : vector<8xf32> to vector<8x1xf32>
    %44 = vector.broadcast %43 : vector<8x1xf32> to vector<8x128xf32>
    %45 = arith.subf %41, %44 : vector<8x128xf32>
    %46 = math.exp %45 : vector<8x128xf32>
    %cst_20 = arith.constant dense<0.000000e+00> : vector<8xf32>
    %47 = vector.multi_reduction <add>, %46, %cst_20 [1] : vector<8x128xf32> to vector<8xf32>
    %48 = vector.shape_cast %47 : vector<8xf32> to vector<8x1xf32>
    %49 = tpu.reciprocal %48 {approx = true} : vector<8x1xf32> -> vector<8x1xf32>
    %50 = vector.broadcast %49 : vector<8x1xf32> to vector<8x128xf32>
    %51 = arith.mulf %46, %50 : vector<8x128xf32>
    %52 = vector.extract_strided_slice %51 {offsets = [0, 0], sizes = [8, 3], strides = [1, 1]} : vector<8x128xf32> to vector<8x3xf32>
    %c0_21 = arith.constant 0 : index
    %c0_22 = arith.constant 0 : index
    %53 = vector.load %arg4[%c0_21, %c0_22] : memref<8x3xf32, #tpu.memory_space<vmem>>, vector<8x3xf32>
    tpu.vector_store %arg4[%c0_21, %c0_22], %52 {strides = array<i32>} : memref<8x3xf32, #tpu.memory_space<vmem>>, vector<8x3xf32>,
    return
  }
  func.func @transform_0(%arg0: i32) -> (i32, i32) {
    %c0_i32 = arith.constant 0 : i32
    %c0_i32_0 = arith.constant 0 : i32
    return %arg0, %c0_i32 : i32, i32
  }
  func.func @transform_1(%arg0: i32) -> (i32, i32, i32) {
    %c0_i32 = arith.constant 0 : i32
    %c0_i32_0 = arith.constant 0 : i32
    %c0_i32_1 = arith.constant 0 : i32
    %c0_i32_2 = arith.constant 0 : i32
    return %c0_i32, %c0_i32_0, %c0_i32_1 : i32, i32, i32
  }
  func.func @transform_2(%arg0: i32) -> (i32, i32) {
    %c0_i32 = arith.constant 0 : i32
    %c0_i32_0 = arith.constant 0 : i32
    %c0_i32_1 = arith.constant 0 : i32
    return %c0_i32, %c0_i32_0 : i32, i32
  }
  func.func @transform_3(%arg0: i32) -> (i32, i32) {
    %c0_i32 = arith.constant 0 : i32
    %c0_i32_0 = arith.constant 0 : i32
    return %arg0, %c0_i32 : i32, i32
  }
}

</mosaic_0001>

<bundles_post_ra>
// kernel: feedforward_structure_to_structure.1
= control target key start
LH: loop header
LB: loop body
LE: loop exit
PB: predicated region body
PF: predicated region fallthrough
CT: control target
= control target key end

     0   :  { %8 = vsyncpa [#allocation3], 0  ;;  %v668_v1 = vmov 0.0   ;;  %vm31_vm0 = vcmask 130048   ;;  %vm669_vm1 = vmmov 0   ;;  %v21_v18 = vlaneseq  ;;  %s833_s0 = inlined_call_operand.vmem [shape: f32[2,16], index: 0, kind: input, shape index: {}]   ;;  %s834_s1 = inlined_call_operand.vmem [shape: bf16[4,128,128], index: 1, kind: input, shape index: {}]   ;;  %s835_s2 = inlined_call_operand.vmem [shape: f32[8,128], index: 2, kind: input, shape index: {}]   ;;  %s836_s3 = inlined_call_operand.hbm [shape: f32[2,3], index: 3, kind: output, shape index: {}]  }
   0x1   :  { %v615_v0 = vld [vmem:[%s834_s1] sm:$0xff]   ;;  %544 = vmatprep.subr.bf16.mxu0 %v668_v1  ;;  %550 = vmatprep.subr.bf16.mxu1 %v668_v1  ;;  %v617_v5 = vld [vmem:[%s834_s1 + $0x48] sm:$0xff]   ;;  %v618_v6 = vld [vmem:[%s834_s1 + $0x50] sm:$0xff]   ;;  %vm423_vm2 = vcmask 23552  }
   0x2   :  { %v16_v2 = vld [vmem:[%s833_s0] sm:$0xff]  ;;  %545 = vmatpush3.bf16.msra.mxu0 %v615_v0  ;;  %546 = vmatprep.mubr.msk.bf16.mxu0 %vm669_vm1, %v668_v1  ;;  %v619_v7 = vld [vmem:[%s834_s1 + $0x58] sm:$0xff]   ;;  %v621_v9 = vld [vmem:[%s834_s1 + $0x68] sm:$0xff]   ;;  %v764_v19 = vshrl.u32 %v21_v18, 7 }
   0x3   :  { %v616_v3 = vld [vmem:[%s834_s1 + $0x40] sm:$0xff]   ;;  %v17_v4 = vpack.c.bf16 %v16_v2, %v16_v2  ;;  %566 = vmatprep.mubr.msk.bf16.mxu1 %vm669_vm1, %v668_v1  ;;  %570 = vmatprep.subr.bf16.mxu0 %v668_v1  ;;  %v622_v10 = vld [vmem:[%s834_s1 + $0x70] sm:$0xff]   ;;  %v623_v11 = vld [vmem:[%s834_s1 + $0x78] sm:$0xff]  }
   0x4   :  { %551 = vmatpush3.bf16.msra.mxu1 %v616_v3  ;;  %v620_v8 = vld [vmem:[%s834_s1 + $0x60] sm:$0xff]   ;;  %v625_v13 = vld [vmem:[%s834_s1 + $0x88] sm:$0xff]   ;;  %v626_v14 = vld [vmem:[%s834_s1 + $0x90] sm:$0xff]   ;;  %v23_v20 = vsub.s32 0, %v764_v19  ;;  %v96_v38 = vsub.s32 1, %v764_v19  ;;  %v207_v49 = vsub.s32 2, %v764_v19 }
   0x5   :  { %552 = vmatprep.subr.bf16.mxu1 %v668_v1  ;;  %547 = vmatmul.mubr.msk.bf16.vlgmr.msra.gmra.mrb[0].mxu0 %vm31_vm0, %v17_v4  ;;  %v624_v12 = vld [vmem:[%s834_s1 + $0x80] sm:$0xff]   ;;  %v627_v15 = vld [vmem:[%s834_s1 + $0x98] sm:$0xff]   ;;  %v629_v17 = vld [vmem:[%s834_s1 + $0xa8] sm:$0xff]   ;;  %v318_v58 = vsub.s32 3, %v764_v19  ;;  %v411_v60 = vsub.s32 4, %v764_v19 }
   0x6   :  { %586 = vmatprep.mubr.msk.bf16.mxu0 %vm669_vm1, %v668_v1  ;;  %571 = vmatpush3.bf16.msra.mxu0 %v624_v12  ;;  %v628_v16 = vld [vmem:[%s834_s1 + $0xa0] sm:$0xff]   ;;  %v630_v30 = vld [vmem:[%s834_s1 + $0xb0] sm:$0xff]   ;;  %v631_v31 = vld [vmem:[%s834_s1 + $0xb8] sm:$0xff]  }
   0x7   :  { %572 = vmatprep.subr.bf16.mxu0 %v668_v1  ;;  %v770_v21 = vld [vmem:[%s835_s2] sm:$0xff]  ;;  %v633_v33 = vld [vmem:[%s834_s1 + $0xc8] sm:$0xff]   ;;  %v634_v34 = vld [vmem:[%s834_s1 + $0xd0] sm:$0xff]  }
   0x8   :  { %553 = vmatpush3.bf16.msra.mxu1 %v617_v5  ;;  %v24_v22 = vrot.slane %v770_v21, %v23_v20  ;;  %v632_v32 = vld [vmem:[%s834_s1 + $0xc0] sm:$0xff]   ;;  %v635_v35 = vld [vmem:[%s834_s1 + $0xd8] sm:$0xff]   ;;  %v637_v37 = vld [vmem:[%s834_s1 + $0xe8] sm:$0xff]   ;;  %v97_v39 = vrot.slane %v770_v21, %v96_v38  ;;  %v208_v50 = vrot.slane %v770_v21, %v207_v49  ;;  %v319_v59 = vrot.slane %v770_v21, %v318_v58 }
   0x9   :  { %554 = vmatprep.subr.bf16.mxu1 %v668_v1  ;;  %v636_v36 = vld [vmem:[%s834_s1 + $0xe0] sm:$0xff]   ;;  %v638_v47 = vld [vmem:[%s834_s1 + $0xf0] sm:$0xff]   ;;  %v639_v48 = vld [vmem:[%s834_s1 + $0xf8] sm:$0xff]   ;;  %v412_v0 = vrot.slane %v770_v21, %v411_v60 }
   0xa   :  { %573 = vmatpush3.bf16.msra.mxu0 %v625_v13 }
   0xb   :  { %574 = vmatprep.subr.bf16.mxu0 %v668_v1 }
   0xc   :  { %555 = vmatpush3.bf16.msra.mxu1 %v618_v6 }
   0xd   :  { %556 = vmatprep.subr.bf16.mxu1 %v668_v1 }
   0xe   :  { %575 = vmatpush3.bf16.msra.mxu0 %v626_v14 }
   0xf   :  { %576 = vmatprep.subr.bf16.mxu0 %v668_v1 }
  0x10   :  { %557 = vmatpush3.bf16.msra.mxu1 %v619_v7 }
  0x11   :  { %558 = vmatprep.subr.bf16.mxu1 %v668_v1 }
  0x12   :  { %577 = vmatpush3.bf16.msra.mxu0 %v627_v15 }
  0x13   :  { %578 = vmatprep.subr.bf16.mxu0 %v668_v1 }
  0x14   :  { %559 = vmatpush3.bf16.msra.mxu1 %v620_v8 }
  0x15   :  { %560 = vmatprep.subr.bf16.mxu1 %v668_v1 }
  0x16   :  { %579 = vmatpush3.bf16.msra.mxu0 %v628_v16 }
  0x17   :  { %580 = vmatprep.subr.bf16.mxu0 %v668_v1 }
  0x18   :  { %561 = vmatpush3.bf16.msra.mxu1 %v621_v9 }
  0x19   :  { %562 = vmatprep.subr.bf16.mxu1 %v668_v1 }
  0x1a   :  { %581 = vmatpush3.bf16.msra.mxu0 %v629_v17 }
  0x1b   :  { %582 = vmatprep.subr.bf16.mxu0 %v668_v1 }
  0x1c   :  { %563 = vmatpush3.bf16.msra.mxu1 %v622_v10 }
  0x1d   :  { %564 = vmatprep.subr.bf16.mxu1 %v668_v1 }
  0x1e   :  { %583 = vmatpush3.bf16.msra.mxu0 %v630_v30 }
  0x1f   :  { %584 = vmatprep.subr.bf16.mxu0 %v668_v1 }
  0x20   :  { %565 = vmatpush3.bf16.msra.mxu1 %v623_v11 }
  0x21   :  { %590 = vmatprep.subr.bf16.mxu1 %v668_v1 }
  0x22   :  { %585 = vmatpush3.bf16.msra.mxu0 %v631_v31 }
  0xd8   :  { %v69_v23 = vpop.f32.mrb[0].mxu0 }
  0xd9   :  { %v70_v24 = vadd.f32 %v69_v23, %v24_v22  ;;  %v548_v25 = vpop.f32.mrb[1].mxu0 }
  0xda   :  { %v72_v26 = vpop.f32.mrb[2].mxu0 }
  0xdb   :  { %v75_v27 = vmax.f32 %v70_v24, 0.0  ;;  %v549_v28 = vpop.f32.mrb[3].mxu0 }
  0xdd   :  { %v76_v29 = vpack.c.bf16 %v75_v27, %v75_v27 }
  0xdf   :  { %567 = vmatmul.mubr.bf16.vlgmr.msra.gmra.mrb[0].mxu1 %v76_v29 }
  0xe0   :  { %606 = vmatprep.mubr.msk.bf16.mxu1 %vm669_vm1, %v668_v1  ;;  %591 = vmatpush3.bf16.msra.mxu1 %v632_v32 }
  0xe1   :  { %592 = vmatprep.subr.bf16.mxu1 %v668_v1 }
  0xe4   :  { %593 = vmatpush3.bf16.msra.mxu1 %v633_v33 }
  0xe5   :  { %594 = vmatprep.subr.bf16.mxu1 %v668_v1 }
  0xe8   :  { %595 = vmatpush3.bf16.msra.mxu1 %v634_v34 }
  0xe9   :  { %596 = vmatprep.subr.bf16.mxu1 %v668_v1 }
  0xec   :  { %597 = vmatpush3.bf16.msra.mxu1 %v635_v35 }
  0xed   :  { %598 = vmatprep.subr.bf16.mxu1 %v668_v1 }
  0xf0   :  { %599 = vmatpush3.bf16.msra.mxu1 %v636_v36 }
  0xf1   :  { %600 = vmatprep.subr.bf16.mxu1 %v668_v1 }
  0xf4   :  { %601 = vmatpush3.bf16.msra.mxu1 %v637_v37 }
  0xf5   :  { %602 = vmatprep.subr.bf16.mxu1 %v668_v1 }
  0xf8   :  { %603 = vmatpush3.bf16.msra.mxu1 %v638_v47 }
  0xf9   :  { %604 = vmatprep.subr.bf16.mxu1 %v668_v1 }
  0xfc   :  { %605 = vmatpush3.bf16.msra.mxu1 %v639_v48 }
 0x1b2   :  { %v180_v40 = vpop.f32.mrb[0].mxu1 }
 0x1b3   :  { %v181_v41 = vadd.f32 %v180_v40, %v97_v39  ;;  %v568_v42 = vpop.f32.mrb[1].mxu1 }
 0x1b4   :  { %v183_v43 = vpop.f32.mrb[2].mxu1 }
 0x1b5   :  { %v186_v44 = vmax.f32 %v181_v41, 0.0  ;;  %v569_v45 = vpop.f32.mrb[3].mxu1 }
 0x1b7   :  { %v187_v46 = vpack.c.bf16 %v186_v44, %v186_v44 }
 0x1b9   :  { %587 = vmatmul.mubr.bf16.vlgmr.msra.gmra.mrb[4].mxu0 %v187_v46 }
 0x28c   :  { %v291_v51 = vpop.f32.mrb[4].mxu0 }
 0x28d   :  { %v292_v52 = vadd.f32 %v291_v51, %v208_v50  ;;  %v588_v53 = vpop.f32.mrb[5].mxu0 }
 0x28e   :  { %v294_v54 = vpop.f32.mrb[6].mxu0 }
 0x28f   :  { %v297_v55 = vmax.f32 %v292_v52, 0.0  ;;  %v589_v56 = vpop.f32.mrb[7].mxu0 }
 0x291   :  { %v298_v57 = vpack.c.bf16 %v297_v55, %v297_v55 }
 0x293   :  { %607 = vmatmul.mubr.bf16.vlgmr.msra.gmra.mrb[4].mxu1 %v298_v57 }
 0x366   :  { %v402_v61 = vpop.f32.mrb[4].mxu1 }
 0x367   :  { %v403_v62 = vadd.f32 %v402_v61, %v319_v59  ;;  %v608_v63 = vpop.f32.mrb[5].mxu1 }
 0x368   :  { %v405_v1 = vpop.f32.mrb[6].mxu1 }
 0x369   :  { %v408_v2 = vmax.f32 %v403_v62, 0.0  ;;  %v609_v3 = vpop.f32.mrb[7].mxu1 }
 0x36b   :  { %v413_v4 = vadd.f32 %v412_v0, %v408_v2 }
 0x36d   :  { %414 = vmax.xlane.f32.xlu0 %v413_v4 }
 0x3fa   :  { %v415_v5 = vpop.xlane.xlu0 %414 }
 0x3fb   :  { %v416_v6 = vsub.f32 %v413_v4, %v415_v5 }
 0x3fd   :  { %v417_v7 = vmul.f32 1.442695, %v416_v6 }
 0x3ff   :  { %640 = vpow2.f32 %v417_v7 }
 0x409   :  { %v641_v8 = vpop.eup %640 }
 0x40a   :  { %419 = vadd.xlane.f32.xlu0 %v641_v8 }
 0x497   :  { %v420_v9 = vpop.xlane.xlu0 %419 }
 0x498   :  { %642 = vrcp.f32 %v420_v9 }
 0x4a2   :  { %v643_v10 = vpop.eup %642 }
 0x4a3   :  { %v422_v11 = vmul.f32 %v643_v10, %v641_v8 }
 0x4a5   :  { %424 = vst.msk [vmem:[#allocation2] sm:$0xff] %vm423_vm2, %v422_v11 }
 0x4a6   :  { %429 = vsyncadd [#allocation3], 96  ;;  %s670_s1 = smov [#allocation2]  }
 0x4a7   :  { %s430_s9 = sshll.u32 %s670_s1, 4  ;;  %s431_s9 = int_to_ptr.vmem [resolvable:$true] %s430_s9 }
 0x4a8   :  { %s644_s10 = scalar_lea.vmem %s431_s9, 32  ;;  %s648_s11 = scalar_lea.vmem %s431_s9, 128 }
 0x4a9   :  { %p645_p0 = scmp.ne.s32.totalorder %s431_s9, %s644_s10  ;;  %p649_p1 = scmp.lt.s32.totalorder %s431_s9, %s431_s9 }
 0x4aa   :  { %p650_p2 = scmp.lt.s32.totalorder %s648_s11, %s644_s10 }
 0x4ac   :  { %p651_p3 = por %p650_p2, %p649_p1 }
 0x4ae   :  { %p652_p4 = pnand %p651_p3, %p645_p0 }
 0x4b0   :  { %655 = shalt.err (!%p652_p4)
}
 0x4b1   :  { %s656_s14 = scalar_lea.hbm %s836_s3, 32 }
 0x4b2   :  { %p657_p5 = scmp.ne.s32.totalorder %s836_s3, %s656_s14  ;;  %p660_p6 = scmp.lt.u32.totalorder %s656_s14, %s836_s3 }
 0x4b4   :  { %p662_p7 = pnand %p660_p6, %p657_p5 }
 0x4b6   :  { %665 = shalt.err (!%p662_p7)
}
 0x4b7   :  { %s671_s19 = smov 32   ;;  %s672_s2 = smov 2  }
 0x4b8   :  { %436 = dma.vmem_to_hbm [thread:$0]  %s431_s9, 32, %s836_s3, [#allocation3], %s671_s19, %s671_s19, %s672_s2  }
 0x4b9   :  { %666 = dma.done.wait [#allocation3], 128  }
 0x4ba   :  { %667 = vsyncadd [#allocation3], 4294967168 }
 0x4bb   :  { %440 = vsyncpa [#allocation3], 1 }

</bundles_post_ra>
